<compile_context>
chip_gen: v7x
topology: tpu7x:2x2x1
jax: 0.10.0
libtpu: 0.0.40
codegen_flags: <defaults>
</compile_context>

<pallas_src>
import functools

import jax
import jax.numpy as jnp
from jax.experimental import pallas as pl
from jax.experimental.pallas import tpu as pltpu


def _round_up(n, m):
    return ((n + m - 1) // m) * m


def _mlp_kernel(x_ref, w1_ref, b1_ref, w2_ref, b2_ref, w3_ref, b3_ref,
                out_ref, *, pre_softmax):
    # x tile: (TB, 784) f32.  Weights are pre-transposed (in, out), possibly
    # bf16; all matmuls accumulate in f32; bias/ReLU/log_softmax stay f32.
    cdt = w1_ref.dtype
    x = x_ref[...]
    if cdt != jnp.float32:
        x = x.astype(cdt)

    # fc1 -> ReLU    (dropout is identity in eval mode)
    h1 = jnp.dot(x, w1_ref[...], preferred_element_type=jnp.float32)
    h1 = jnp.maximum(h1 + b1_ref[...], 0.0)                    # (TB, 320) f32
    if cdt != jnp.float32:
        h1 = h1.astype(cdt)

    # fc2 -> ReLU    (dropout is identity in eval mode)
    h2 = jnp.dot(h1, w2_ref[...], preferred_element_type=jnp.float32)
    h2 = jnp.maximum(h2 + b2_ref[...], 0.0)                    # (TB, 50) f32
    if cdt != jnp.float32:
        h2 = h2.astype(cdt)

    # fc3 -> ReLU
    h3 = jnp.dot(h2, w3_ref[...], preferred_element_type=jnp.float32)
    h3 = jnp.maximum(h3 + b3_ref[...], 0.0)                    # (TB, 10) f32

    if pre_softmax:
        out_ref[...] = h3
    else:
        # log_softmax along the class dim, f32 epilogue.
        m = jnp.max(h3, axis=-1, keepdims=True)
        z = h3 - m
        lse = jnp.log(jnp.sum(jnp.exp(z), axis=-1, keepdims=True))
        out_ref[...] = z - lse


def prepare_params(params, compute_dtype=jnp.float32):
    """One-time layout prep: weights -> (in, out) in compute_dtype, biases -> (1, out) f32.

    PyTorch Linear stores W as (out, in) and computes y = x @ W.T + b.
    Doing the transpose here (once, at load time) keeps it off the per-call
    forward path.
    """
    w1, b1, w2, b2, w3, b3 = params
    return (
        jnp.asarray(w1.T, compute_dtype),          # (784, 320)
        jnp.asarray(b1, jnp.float32).reshape(1, -1),
        jnp.asarray(w2.T, compute_dtype),          # (320, 50)
        jnp.asarray(b2, jnp.float32).reshape(1, -1),
        jnp.asarray(w3.T, compute_dtype),          # (50, 10)
        jnp.asarray(b3, jnp.float32).reshape(1, -1),
    )


def mlp_forward(x, prepared_params, pre_softmax=False, block_b=256):
    """x: (B, 1, 28, 28) float32 (NCHW, like PyTorch MNIST). Returns (B, 10) f32."""
    w1t, b1r, w2t, b2r, w3t, b3r = prepared_params
    B = x.shape[0]
    x2 = x.reshape(B, -1).astype(jnp.float32)                  # (B, 784)

    # Sublane-aligned batch tile; pad B up to a multiple of the tile.
    tb = min(block_b, _round_up(B, 8))
    Bp = _round_up(B, tb)
    if Bp != B:
        x2 = jnp.pad(x2, ((0, Bp - B), (0, 0)))
    grid = (Bp // tb,)

    kernel = functools.partial(_mlp_kernel, pre_softmax=pre_softmax)

    # Weights / biases: constant block index every grid step -> stay resident
    # in VMEM, DMA'd once.  x / out: tiled along the batch axis.
    resident = lambda arr: pl.BlockSpec(arr.shape, lambda i: (0, 0))
    in_specs = [
        pl.BlockSpec((tb, 784), lambda i: (i, 0)),
        resident(w1t), resident(b1r),
        resident(w2t), resident(b2r),
        resident(w3t), resident(b3r),
    ]
    out_specs = pl.BlockSpec((tb, 10), lambda i: (i, 0))

    param_bytes = sum(int(a.size) * a.dtype.itemsize
                      for a in (w1t, b1r, w2t, b2r, w3t, b3r))
    cost = pl.CostEstimate(
        flops=2 * Bp * (784 * 320 + 320 * 50 + 50 * 10),
        transcendentals=Bp * 11,                       # exp(10) + log per row
        bytes_accessed=int(x2.size) * 4 + param_bytes + Bp * 10 * 4,
    )

    out = pl.pallas_call(
        kernel,
        out_shape=jax.ShapeDtypeStruct((Bp, 10), jnp.float32),
        grid_spec=pltpu.PrefetchScalarGridSpec(
            num_scalar_prefetch=0,
            grid=grid,
            in_specs=in_specs,
            out_specs=out_specs,
        ),
        compiler_params=pltpu.CompilerParams(
            dimension_semantics=("parallel",),
        ),
        cost_estimate=cost,
    )(x2, w1t, b1r, w2t, b2r, w3t, b3r)

    return out[:B]


def init_params(key):
    """Deterministic init mimicking PyTorch nn.Linear default U(-1/sqrt(in), 1/sqrt(in))."""
    dims = [(320, 784), (50, 320), (10, 50)]
    params = []
    for i, (out_d, in_d) in enumerate(dims):
        kw, kb = jax.random.split(jax.random.fold_in(key, i))
        bound = 1.0 / (in_d ** 0.5)
        w = jax.random.uniform(kw, (out_d, in_d), jnp.float32, -bound, bound)
        b = jax.random.uniform(kb, (out_d,), jnp.float32, -bound, bound)
        params += [w, b]
    return tuple(params)


def mlp_forward_ref(x, params, pre_softmax=False):
    """Plain-JAX reference matching the PyTorch module exactly."""
    w1, b1, w2, b2, w3, b3 = params
    h = x.reshape(x.shape[0], -1)
    h = jnp.maximum(h @ w1.T + b1, 0.0)
    h = jnp.maximum(h @ w2.T + b2, 0.0)
    h = jnp.maximum(h @ w3.T + b3, 0.0)
    if pre_softmax:
        return h
    return jax.nn.log_softmax(h, axis=1)


if __name__ == "__main__":
    key = jax.random.PRNGKey(0)
    kx, kp = jax.random.split(key)

    B = 8
    x = jax.random.normal(kx, (B, 1, 28, 28), jnp.float32)     # MNIST-shaped input
    params = init_params(kp)

    # f32 weights: bit-tight check against the reference.
    prepared_f32 = prepare_params(params, jnp.float32)
    out = jax.block_until_ready(mlp_forward(x, prepared_f32, pre_softmax=False))
    ref = mlp_forward_ref(x, params, pre_softmax=False)
    assert out.shape == (B, 10)
    assert jnp.allclose(out, ref, atol=1e-5, rtol=1e-5)

    out_pre = jax.block_until_ready(mlp_forward(x, prepared_f32, pre_softmax=True))
    ref_pre = mlp_forward_ref(x, params, pre_softmax=True)
    assert jnp.allclose(out_pre, ref_pre, atol=1e-5, rtol=1e-5)

    # bf16 weight storage (halves fc1 weight traffic, MXU-native); loose check.
    prepared_bf16 = prepare_params(params, jnp.bfloat16)
    out_bf16 = jax.block_until_ready(mlp_forward(x, prepared_bf16, pre_softmax=False))
    assert out_bf16.shape == (B, 10)
    assert bool(jnp.all(jnp.isfinite(out_bf16)))
    assert jnp.allclose(out_bf16, ref, atol=1e-1, rtol=1e-1)

    print("KERNEL_OK")
</pallas_src>

<mosaic_0001>
module attributes {stable_mosaic.version = 11 : i64} {
  func.func @_mlp_kernel(%arg0: i32, %arg1: memref<8x784xf32, #tpu.memory_space<vmem>>, %arg2: memref<784x320xf32, #tpu.memory_space<vmem>>, %arg3: memref<1x320xf32, #tpu.memory_space<vmem>>, %arg4: memref<320x50xf32, #tpu.memory_space<vmem>>, %arg5: memref<1x50xf32, #tpu.memory_space<vmem>>, %arg6: memref<50x10xf32, #tpu.memory_space<vmem>>, %arg7: memref<1x10xf32, #tpu.memory_space<vmem>>, %arg8: memref<8x10xf32, #tpu.memory_space<vmem>>) attributes {dimension_semantics = [#tpu.dimension_semantics<parallel>], iteration_bounds = array<i64: 1>, scalar_prefetch = 0 : i64, scratch_operands = 0 : i64, tpu.core_type = #tpu.core_type<tc>, window_params = [{transform_indices = @transform_0, window_bounds = array<i64: 8, 784>}, {pipeline_mode = #tpu.pipeline_mode<synchronous>, transform_indices = @transform_1, window_bounds = array<i64: 784, 320>}, {pipeline_mode = #tpu.pipeline_mode<synchronous>, transform_indices = @transform_2, window_bounds = array<i64: 1, 320>}, {pipeline_mode = #tpu.pipeline_mode<synchronous>, transform_indices = @transform_3, window_bounds = array<i64: 320, 50>}, {pipeline_mode = #tpu.pipeline_mode<synchronous>, transform_indices = @transform_4, window_bounds = array<i64: 1, 50>}, {pipeline_mode = #tpu.pipeline_mode<synchronous>, transform_indices = @transform_5, window_bounds = array<i64: 50, 10>}, {pipeline_mode = #tpu.pipeline_mode<synchronous>, transform_indices = @transform_6, window_bounds = array<i64: 1, 10>}, {transform_indices = @transform_7, window_bounds = array<i64: 8, 10>}]} {
    %c0 = arith.constant 0 : index
    %c0_0 = arith.constant 0 : index
    %0 = vector.load %arg1[%c0, %c0_0] : memref<8x784xf32, #tpu.memory_space<vmem>>, vector<8x784xf32>
    %c0_1 = arith.constant 0 : index
    %c0_2 = arith.constant 0 : index
    %1 = vector.load %arg2[%c0_1, %c0_2] : memref<784x320xf32, #tpu.memory_space<vmem>>, vector<784x320xf32>
    %cst = arith.constant dense<0.000000e+00> : vector<8x320xf32>
    %2 = tpu.matmul %0, %1, %cst {dimension_numbers = #tpu.dot_dimension_numbers<[1], [0], [0], [1], [0, 0, 1, 1], [], []>} : vector<8x784xf32>, vector<784x320xf32>, vector<8x320xf32> -> vector<8x320xf32>
    %c0_3 = arith.constant 0 : index
    %c0_4 = arith.constant 0 : index
    %3 = vector.load %arg3[%c0_3, %c0_4] : memref<1x320xf32, #tpu.memory_space<vmem>>, vector<1x320xf32>
    %4 = vector.broadcast %3 : vector<1x320xf32> to vector<8x320xf32>
    %5 = arith.addf %2, %4 : vector<8x320xf32>
    %cst_5 = arith.constant 0.000000e+00 : f32
    %6 = vector.broadcast %cst_5 : f32 to vector<8x320xf32>
    %7 = arith.maximumf %5, %6 : vector<8x320xf32>
    %c0_6 = arith.constant 0 : index
    %c0_7 = arith.constant 0 : index
    %8 = vector.load %arg4[%c0_6, %c0_7] : memref<320x50xf32, #tpu.memory_space<vmem>>, vector<320x50xf32>
    %cst_8 = arith.constant dense<0.000000e+00> : vector<8x50xf32>
    %9 = tpu.matmul %7, %8, %cst_8 {dimension_numbers = #tpu.dot_dimension_numbers<[1], [0], [0], [1], [0, 0, 1, 1], [], []>} : vector<8x320xf32>, vector<320x50xf32>, vector<8x50xf32> -> vector<8x50xf32>
    %c0_9 = arith.constant 0 : index
    %c0_10 = arith.constant 0 : index
    %10 = vector.load %arg5[%c0_9, %c0_10] : memref<1x50xf32, #tpu.memory_space<vmem>>, vector<1x50xf32>
    %11 = vector.broadcast %10 : vector<1x50xf32> to vector<8x50xf32>
    %12 = arith.addf %9, %11 : vector<8x50xf32>
    %cst_11 = arith.constant 0.000000e+00 : f32
    %13 = vector.broadcast %cst_11 : f32 to vector<8x50xf32>
    %14 = arith.maximumf %12, %13 : vector<8x50xf32>
    %c0_12 = arith.constant 0 : index
    %c0_13 = arith.constant 0 : index
    %15 = vector.load %arg6[%c0_12, %c0_13] : memref<50x10xf32, #tpu.memory_space<vmem>>, vector<50x10xf32>
    %cst_14 = arith.constant dense<0.000000e+00> : vector<8x10xf32>
    %16 = tpu.matmul %14, %15, %cst_14 {dimension_numbers = #tpu.dot_dimension_numbers<[1], [0], [0], [1], [0, 0, 1, 1], [], []>} : vector<8x50xf32>, vector<50x10xf32>, vector<8x10xf32> -> vector<8x10xf32>
    %c0_15 = arith.constant 0 : index
    %c0_16 = arith.constant 0 : index
    %17 = vector.load %arg7[%c0_15, %c0_16] : memref<1x10xf32, #tpu.memory_space<vmem>>, vector<1x10xf32>
    %18 = vector.broadcast %17 : vector<1x10xf32> to vector<8x10xf32>
    %19 = arith.addf %16, %18 : vector<8x10xf32>
    %cst_17 = arith.constant 0.000000e+00 : f32
    %20 = vector.broadcast %cst_17 : f32 to vector<8x10xf32>
    %21 = arith.maximumf %19, %20 : vector<8x10xf32>
    %cst_18 = arith.constant dense<0xFF800000> : vector<8xf32>
    %22 = vector.multi_reduction <maximumf>, %21, %cst_18 [1] : vector<8x10xf32> to vector<8xf32>
    %23 = vector.shape_cast %22 : vector<8xf32> to vector<8x1xf32>
    %24 = vector.broadcast %23 : vector<8x1xf32> to vector<8x10xf32>
    %25 = arith.subf %21, %24 : vector<8x10xf32>
    %26 = math.exp %25 : vector<8x10xf32>
    %cst_19 = arith.constant dense<0.000000e+00> : vector<8xf32>
    %27 = vector.multi_reduction <add>, %26, %cst_19 [1] : vector<8x10xf32> to vector<8xf32>
    %28 = vector.shape_cast %27 : vector<8xf32> to vector<8x1xf32>
    %29 = math.log %28 : vector<8x1xf32>
    %30 = vector.broadcast %29 : vector<8x1xf32> to vector<8x10xf32>
    %31 = arith.subf %25, %30 : vector<8x10xf32>
    %c0_20 = arith.constant 0 : index
    %c0_21 = arith.constant 0 : index
    %32 = vector.load %arg8[%c0_20, %c0_21] : memref<8x10xf32, #tpu.memory_space<vmem>>, vector<8x10xf32>
    tpu.vector_store %arg8[%c0_20, %c0_21], %31 {strides = array<i32>} : memref<8x10xf32, #tpu.memory_space<vmem>>, vector<8x10xf32>,
    return
  }
  func.func @transform_0(%arg0: i32) -> (i32, i32) {
    %c0_i32 = arith.constant 0 : i32
    %c0_i32_0 = arith.constant 0 : i32
    return %arg0, %c0_i32 : i32, i32
  }
  func.func @transform_1(%arg0: i32) -> (i32, i32) {
    %c0_i32 = arith.constant 0 : i32
    %c0_i32_0 = arith.constant 0 : i32
    %c0_i32_1 = arith.constant 0 : i32
    return %c0_i32, %c0_i32_0 : i32, i32
  }
  func.func @transform_2(%arg0: i32) -> (i32, i32) {
    %c0_i32 = arith.constant 0 : i32
    %c0_i32_0 = arith.constant 0 : i32
    %c0_i32_1 = arith.constant 0 : i32
    return %c0_i32, %c0_i32_0 : i32, i32
  }
  func.func @transform_3(%arg0: i32) -> (i32, i32) {
    %c0_i32 = arith.constant 0 : i32
    %c0_i32_0 = arith.constant 0 : i32
    %c0_i32_1 = arith.constant 0 : i32
    return %c0_i32, %c0_i32_0 : i32, i32
  }
  func.func @transform_4(%arg0: i32) -> (i32, i32) {
    %c0_i32 = arith.constant 0 : i32
    %c0_i32_0 = arith.constant 0 : i32
    %c0_i32_1 = arith.constant 0 : i32
    return %c0_i32, %c0_i32_0 : i32, i32
  }
  func.func @transform_5(%arg0: i32) -> (i32, i32) {
    %c0_i32 = arith.constant 0 : i32
    %c0_i32_0 = arith.constant 0 : i32
    %c0_i32_1 = arith.constant 0 : i32
    return %c0_i32, %c0_i32_0 : i32, i32
  }
  func.func @transform_6(%arg0: i32) -> (i32, i32) {
    %c0_i32 = arith.constant 0 : i32
    %c0_i32_0 = arith.constant 0 : i32
    %c0_i32_1 = arith.constant 0 : i32
    return %c0_i32, %c0_i32_0 : i32, i32
  }
  func.func @transform_7(%arg0: i32) -> (i32, i32) {
    %c0_i32 = arith.constant 0 : i32
    %c0_i32_0 = arith.constant 0 : i32
    return %arg0, %c0_i32 : i32, i32
  }
}

</mosaic_0001>

<bundles_post_ra>
// kernel: tpu_custom_call.1
= control target key start
LH: loop header
LB: loop body
LE: loop exit
PB: predicated region body
PF: predicated region fallthrough
CT: control target
= control target key end

     0   :  { %v1827_v7 = vmov 0.0   ;;  %vm345_vm0 = vcmask 130048   ;;  %s2973_s0 = inlined_call_operand.vmem [shape: f32[8,784], index: 0, kind: input, shape index: {}]   ;;  %s2974_s1 = inlined_call_operand.vmem [shape: f32[784,320], index: 1, kind: input, shape index: {}]   ;;  %s2975_s2 = inlined_call_operand.vmem [shape: f32[1,320], index: 2, kind: input, shape index: {}]   ;;  %s2976_s3 = inlined_call_operand.vmem [shape: f32[320,50], index: 3, kind: input, shape index: {}]   ;;  %s2977_s4 = inlined_call_operand.vmem [shape: f32[1,50], index: 4, kind: input, shape index: {}]   ;;  %s2978_s5 = inlined_call_operand.vmem [shape: f32[50,10], index: 5, kind: input, shape index: {}]   ;;  %s2979_s6 = inlined_call_operand.vmem [shape: f32[1,10], index: 6, kind: input, shape index: {}]   ;;  %s2980_s7 = inlined_call_operand.hbm [shape: f32[8,10], index: 7, kind: output, shape index: {}]  }
   0x1   :  { %v35_v0 = vld [vmem:[%s2974_s1 + $0x8] sm:$0xff]  ;;  %v38_v1 = vld [vmem:[%s2974_s1 + $0x20] sm:$0xff]  ;;  %v37_v4 = vld [vmem:[%s2974_s1 + $0x18] sm:$0xff]  ;;  %626 = vmatprep.mubr.f32.mxu1 %v1827_v7 }
   0x2   :  { %v34_v2 = vld [vmem:[%s2974_s1] sm:$0xff]  ;;  %v1439_v3 = vpack.c.bf16 %v38_v1, %v35_v0  ;;  %v41_v5 = vld [vmem:[%s2974_s1 + $0x38] sm:$0xff]  ;;  %v44_v6 = vld [vmem:[%s2974_s1 + $0x50] sm:$0xff] }
   0x3   :  { %v1441_v8 = vpack.c.bf16 %v37_v4, %v34_v2  ;;  %v1443_v9 = vpack.c.bf16 %v44_v6, %v41_v5  ;;  %v40_v10 = vld [vmem:[%s2974_s1 + $0x30] sm:$0xff]  ;;  %v43_v11 = vld [vmem:[%s2974_s1 + $0x48] sm:$0xff]  ;;  %v50_v13 = vld [vmem:[%s2974_s1 + $0x80] sm:$0xff] }
   0x4   :  { %v47_v12 = vld [vmem:[%s2974_s1 + $0x68] sm:$0xff]  ;;  %1440 = vmatprep.subr.bf16.mxu0 %v1439_v3  ;;  %v1445_v14 = vpack.c.bf16 %v43_v11, %v40_v10  ;;  %v46_v16 = vld [vmem:[%s2974_s1 + $0x60] sm:$0xff]  ;;  %v49_v17 = vld [vmem:[%s2974_s1 + $0x78] sm:$0xff] }
   0x5   :  { %1442 = vmatpush1.bf16.msra.mxu0 %v1441_v8  ;;  %v1447_v15 = vpack.c.bf16 %v50_v13, %v47_v12  ;;  %v53_v18 = vld [vmem:[%s2974_s1 + $0x98] sm:$0xff]  ;;  %v56_v19 = vld [vmem:[%s2974_s1 + $0xb0] sm:$0xff]  ;;  %v1449_v20 = vpack.c.bf16 %v49_v17, %v46_v16  ;;  %v55_v23 = vld [vmem:[%s2974_s1 + $0xa8] sm:$0xff] }
   0x6   :  { %1444 = vmatprep.subr.bf16.mxu0 %v1443_v9  ;;  %v1451_v21 = vpack.c.bf16 %v56_v19, %v53_v18  ;;  %v52_v22 = vld [vmem:[%s2974_s1 + $0x90] sm:$0xff]  ;;  %v59_v24 = vld [vmem:[%s2974_s1 + $0xc8] sm:$0xff]  ;;  %v62_v25 = vld [vmem:[%s2974_s1 + $0xe0] sm:$0xff] }
   0x7   :  { %v1453_v26 = vpack.c.bf16 %v55_v23, %v52_v22  ;;  %v1455_v27 = vpack.c.bf16 %v62_v25, %v59_v24  ;;  %v58_v28 = vld [vmem:[%s2974_s1 + $0xc0] sm:$0xff]  ;;  %v61_v29 = vld [vmem:[%s2974_s1 + $0xd8] sm:$0xff]  ;;  %v68_v31 = vld [vmem:[%s2974_s1 + $0x110] sm:$0xff] }
   0x8   :  { %v65_v30 = vld [vmem:[%s2974_s1 + $0xf8] sm:$0xff]  ;;  %v1457_v32 = vpack.c.bf16 %v61_v29, %v58_v28  ;;  %v323_v33 = vld [vmem:[%s2974_s1 + $0x908] sm:$0xff]  ;;  %v326_v34 = vld [vmem:[%s2974_s1 + $0x920] sm:$0xff] }
   0x9   :  { %1446 = vmatpush1.bf16.msra.mxu0 %v1445_v14  ;;  %v322_v35 = vld [vmem:[%s2974_s1 + $0x900] sm:$0xff]  ;;  %v1459_v36 = vpack.c.bf16 %v68_v31, %v65_v30  ;;  %v64_v37 = vld [vmem:[%s2974_s1 + $0xf0] sm:$0xff]  ;;  %v67_v38 = vld [vmem:[%s2974_s1 + $0x108] sm:$0xff]  ;;  %v1631_v39 = vpack.c.bf16 %v326_v34, %v323_v33 }
   0xa   :  { %1448 = vmatprep.subr.bf16.mxu0 %v1447_v15  ;;  %v325_v40 = vld [vmem:[%s2974_s1 + $0x918] sm:$0xff]  ;;  %v71_v41 = vld [vmem:[%s2974_s1 + $0x128] sm:$0xff]  ;;  %v74_v42 = vld [vmem:[%s2974_s1 + $0x140] sm:$0xff]  ;;  %v1461_v48 = vpack.c.bf16 %v67_v38, %v64_v37 }
   0xb   :  { %v1633_v43 = vpack.c.bf16 %v325_v40, %v322_v35  ;;  %v84_v44 = vld [vmem:[%s2974_s1 + $0x190] sm:$0xff]  ;;  %v70_v45 = vld [vmem:[%s2974_s1 + $0x120] sm:$0xff]  ;;  %1632 = vmatprep.subr.bf16.mxu1 %v1631_v39  ;;  %v87_v46 = vld [vmem:[%s2974_s1 + $0x1a8] sm:$0xff]  ;;  %v1463_v53 = vpack.c.bf16 %v74_v42, %v71_v41 }
   0xc   :  { %v36_v47 = vld [vmem:[%s2974_s1 + $0x10] sm:$0xff]  ;;  %v73_v49 = vld [vmem:[%s2974_s1 + $0x138] sm:$0xff]  ;;  %v1635_v50 = vpack.c.bf16 %v87_v46, %v84_v44  ;;  %v39_v52 = vld [vmem:[%s2974_s1 + $0x28] sm:$0xff] }
   0xd   :  { %1450 = vmatpush1.bf16.msra.mxu0 %v1449_v20  ;;  %1634 = vmatpush1.bf16.msra.mxu1 %v1633_v43  ;;  %v1980_v51 = vld [vmem:[%s2973_s0 + $0x30] sm:$0xff]  ;;  %v77_v54 = vld [vmem:[%s2974_s1 + $0x158] sm:$0xff]  ;;  %v1637_v56 = vpack.c.bf16 %v39_v52, %v36_v47  ;;  %v90_v57 = vld [vmem:[%s2974_s1 + $0x1c0] sm:$0xff]  ;;  %v1465_v62 = vpack.c.bf16 %v73_v49, %v70_v45 }
   0xe   :  { %1452 = vmatprep.subr.bf16.mxu0 %v1451_v21  ;;  %v80_v55 = vld [vmem:[%s2974_s1 + $0x170] sm:$0xff]  ;;  %1636 = vmatprep.subr.bf16.mxu1 %v1635_v50  ;;  %v93_v58 = vld [vmem:[%s2974_s1 + $0x1d8] sm:$0xff]  ;;  %v42_v59 = vld [vmem:[%s2974_s1 + $0x40] sm:$0xff] }
   0xf   :  { %v45_v60 = vld [vmem:[%s2974_s1 + $0x58] sm:$0xff]  ;;  %v1639_v61 = vpack.c.bf16 %v93_v58, %v90_v57  ;;  %v76_v63 = vld [vmem:[%s2974_s1 + $0x150] sm:$0xff]  ;;  %v99_v2 = vld [vmem:[%s2974_s1 + $0x208] sm:$0xff]  ;;  %v1467_v3 = vpack.c.bf16 %v80_v55, %v77_v54 }
  0x10   :  { %1229 = vmatmul.mubr.msk.f32.vlgmr.msra.gmra.mrb[0].mxu1 %vm345_vm0, %v1980_v51  ;;  %v1641_v0 = vpack.c.bf16 %v45_v60, %v42_v59  ;;  %v96_v1 = vld [vmem:[%s2974_s1 + $0x1f0] sm:$0xff]  ;;  %v79_v4 = vld [vmem:[%s2974_s1 + $0x168] sm:$0xff]  ;;  %v86_v10 = vld [vmem:[%s2974_s1 + $0x1a0] sm:$0xff] }
  0x11   :  { %1454 = vmatpush1.bf16.msra.mxu0 %v1453_v26  ;;  %1638 = vmatpush3.bf16.msra.mxu1 %v1637_v56  ;;  %v1643_v5 = vpack.c.bf16 %v99_v2, %v96_v1  ;;  %v48_v6 = vld [vmem:[%s2974_s1 + $0x70] sm:$0xff]  ;;  %v51_v8 = vld [vmem:[%s2974_s1 + $0x88] sm:$0xff]  ;;  %v102_v11 = vld [vmem:[%s2974_s1 + $0x220] sm:$0xff]  ;;  %v1469_v13 = vpack.c.bf16 %v79_v4, %v76_v63 }
  0x12   :  { %1456 = vmatprep.subr.bf16.mxu0 %v1455_v27  ;;  %1640 = vmatprep.subr.bf16.mxu1 %v1639_v61  ;;  %v83_v9 = vld [vmem:[%s2974_s1 + $0x188] sm:$0xff]  ;;  %v105_v12 = vld [vmem:[%s2974_s1 + $0x238] sm:$0xff]  ;;  %v82_v14 = vld [vmem:[%s2974_s1 + $0x180] sm:$0xff]  ;;  %v1645_v16 = vpack.c.bf16 %v51_v8, %v48_v6 }
  0x13   :  { %v85_v15 = vld [vmem:[%s2974_s1 + $0x198] sm:$0xff]  ;;  %v28_v17 = vld [vmem:[%s2973_s0 + $0x8] sm:$0xff]  ;;  %v1471_v18 = vpack.c.bf16 %v86_v10, %v83_v9  ;;  %v1647_v20 = vpack.c.bf16 %v105_v12, %v102_v11  ;;  %v54_v21 = vld [vmem:[%s2974_s1 + $0xa0] sm:$0xff] }
  0x14   :  { %v89_v19 = vld [vmem:[%s2974_s1 + $0x1b8] sm:$0xff]  ;;  %v92_v23 = vld [vmem:[%s2974_s1 + $0x1d0] sm:$0xff]  ;;  %413 = vmatprep.mubr.f32.mxu0 %v28_v17  ;;  %v111_v25 = vld [vmem:[%s2974_s1 + $0x268] sm:$0xff]  ;;  %697 = vmatprep.mubr.f32.mxu1 %v28_v17  ;;  %v1473_v26 = vpack.c.bf16 %v85_v15, %v82_v14 }
  0x15   :  { %1458 = vmatpush1.bf16.msra.mxu0 %v1457_v32  ;;  %1642 = vmatpush3.bf16.msra.mxu1 %v1641_v0  ;;  %v57_v22 = vld [vmem:[%s2974_s1 + $0xb8] sm:$0xff]  ;;  %v108_v24 = vld [vmem:[%s2974_s1 + $0x250] sm:$0xff]  ;;  %v91_v28 = vld [vmem:[%s2974_s1 + $0x1c8] sm:$0xff]  ;;  %v1475_v30 = vpack.c.bf16 %v92_v23, %v89_v19 }
  0x16   :  { %1460 = vmatprep.subr.bf16.mxu0 %v1459_v36  ;;  %1644 = vmatprep.subr.bf16.mxu1 %v1643_v5  ;;  %v88_v27 = vld [vmem:[%s2974_s1 + $0x1b0] sm:$0xff]  ;;  %v1649_v29 = vpack.c.bf16 %v57_v22, %v54_v21  ;;  %v95_v31 = vld [vmem:[%s2974_s1 + $0x1e8] sm:$0xff]  ;;  %v1651_v32 = vpack.c.bf16 %v111_v25, %v108_v24  ;;  %v98_v35 = vld [vmem:[%s2974_s1 + $0x200] sm:$0xff] }
  0x17   :  { %v60_v33 = vld [vmem:[%s2974_s1 + $0xd0] sm:$0xff]  ;;  %v63_v34 = vld [vmem:[%s2974_s1 + $0xe8] sm:$0xff]  ;;  %v114_v36 = vld [vmem:[%s2974_s1 + $0x280] sm:$0xff]  ;;  %v1477_v38 = vpack.c.bf16 %v91_v28, %v88_v27  ;;  %v1479_v42 = vpack.c.bf16 %v98_v35, %v95_v31 }
  0x18   :  { %v117_v37 = vld [vmem:[%s2974_s1 + $0x298] sm:$0xff]  ;;  %v94_v39 = vld [vmem:[%s2974_s1 + $0x1e0] sm:$0xff]  ;;  %v1653_v41 = vpack.c.bf16 %v63_v34, %v60_v33  ;;  %v104_v47 = vld [vmem:[%s2974_s1 + $0x230] sm:$0xff] }
  0x19   :  { %1462 = vmatpush1.bf16.msra.mxu0 %v1461_v48  ;;  %1646 = vmatpush3.bf16.msra.mxu1 %v1645_v16  ;;  %v97_v40 = vld [vmem:[%s2974_s1 + $0x1f8] sm:$0xff]  ;;  %v1655_v44 = vpack.c.bf16 %v117_v37, %v114_v36  ;;  %v66_v45 = vld [vmem:[%s2974_s1 + $0x100] sm:$0xff]  ;;  %v120_v48 = vld [vmem:[%s2974_s1 + $0x2b0] sm:$0xff] }
  0x1a   :  { %1464 = vmatprep.subr.bf16.mxu0 %v1463_v53  ;;  %1648 = vmatprep.subr.bf16.mxu1 %v1647_v20  ;;  %v101_v43 = vld [vmem:[%s2974_s1 + $0x218] sm:$0xff]  ;;  %v123_v49 = vld [vmem:[%s2974_s1 + $0x2c8] sm:$0xff]  ;;  %v1481_v50 = vpack.c.bf16 %v97_v40, %v94_v39  ;;  %v100_v52 = vld [vmem:[%s2974_s1 + $0x210] sm:$0xff] }
  0x1b   :  { %v69_v46 = vld [vmem:[%s2974_s1 + $0x118] sm:$0xff]  ;;  %v103_v53 = vld [vmem:[%s2974_s1 + $0x228] sm:$0xff]  ;;  %v1483_v55 = vpack.c.bf16 %v104_v47, %v101_v43  ;;  %v1659_v57 = vpack.c.bf16 %v123_v49, %v120_v48  ;;  %v72_v58 = vld [vmem:[%s2974_s1 + $0x130] sm:$0xff] }
  0x1c   :  { %v1657_v54 = vpack.c.bf16 %v69_v46, %v66_v45  ;;  %v107_v56 = vld [vmem:[%s2974_s1 + $0x248] sm:$0xff]  ;;  %v110_v60 = vld [vmem:[%s2974_s1 + $0x260] sm:$0xff]  ;;  %v1485_v63 = vpack.c.bf16 %v103_v53, %v100_v52  ;;  %v109_v1 = vld [vmem:[%s2974_s1 + $0x258] sm:$0xff] }
  0x1d   :  { %1466 = vmatpush1.bf16.msra.mxu0 %v1465_v62  ;;  %1650 = vmatpush3.bf16.msra.mxu1 %v1649_v29  ;;  %v75_v59 = vld [vmem:[%s2974_s1 + $0x148] sm:$0xff]  ;;  %v126_v61 = vld [vmem:[%s2974_s1 + $0x2e0] sm:$0xff]  ;;  %v129_v62 = vld [vmem:[%s2974_s1 + $0x2f8] sm:$0xff] }
  0x1e   :  { %1468 = vmatprep.subr.bf16.mxu0 %v1467_v3  ;;  %1652 = vmatprep.subr.bf16.mxu1 %v1651_v32  ;;  %v106_v0 = vld [vmem:[%s2974_s1 + $0x240] sm:$0xff]  ;;  %v1661_v2 = vpack.c.bf16 %v75_v59, %v72_v58  ;;  %v1487_v3 = vpack.c.bf16 %v110_v60, %v107_v56  ;;  %v113_v4 = vld [vmem:[%s2974_s1 + $0x278] sm:$0xff]  ;;  %v1663_v5 = vpack.c.bf16 %v129_v62, %v126_v61  ;;  %v116_v9 = vld [vmem:[%s2974_s1 + $0x290] sm:$0xff] }
  0x1f   :  { %v78_v6 = vld [vmem:[%s2974_s1 + $0x160] sm:$0xff]  ;;  %v81_v8 = vld [vmem:[%s2974_s1 + $0x178] sm:$0xff]  ;;  %v180_v10 = vld [vmem:[%s2974_s1 + $0x490] sm:$0xff]  ;;  %v1489_v12 = vpack.c.bf16 %v109_v1, %v106_v0  ;;  %v1491_v16 = vpack.c.bf16 %v116_v9, %v113_v4 }
  0x20   :  { %v183_v11 = vld [vmem:[%s2974_s1 + $0x4a8] sm:$0xff]  ;;  %v1665_v15 = vpack.c.bf16 %v81_v8, %v78_v6  ;;  %v132_v19 = vld [vmem:[%s2974_s1 + $0x310] sm:$0xff]  ;;  %v122_v21 = vld [vmem:[%s2974_s1 + $0x2c0] sm:$0xff] }
  0x21   :  { %1470 = vmatpush1.bf16.msra.mxu0 %v1469_v13  ;;  %1654 = vmatpush3.bf16.msra.mxu1 %v1653_v41  ;;  %v112_v13 = vld [vmem:[%s2974_s1 + $0x270] sm:$0xff]  ;;  %v115_v14 = vld [vmem:[%s2974_s1 + $0x288] sm:$0xff]  ;;  %v186_v22 = vld [vmem:[%s2974_s1 + $0x4c0] sm:$0xff] }
  0x22   :  { %1472 = vmatprep.subr.bf16.mxu0 %v1471_v18  ;;  %1656 = vmatprep.subr.bf16.mxu1 %v1655_v44  ;;  %v119_v17 = vld [vmem:[%s2974_s1 + $0x2a8] sm:$0xff]  ;;  %v1667_v18 = vpack.c.bf16 %v183_v11, %v180_v10  ;;  %v189_v23 = vld [vmem:[%s2974_s1 + $0x4d8] sm:$0xff]  ;;  %v1493_v24 = vpack.c.bf16 %v115_v14, %v112_v13  ;;  %v118_v25 = vld [vmem:[%s2974_s1 + $0x2a0] sm:$0xff] }
  0x23   :  { %v135_v20 = vld [vmem:[%s2974_s1 + $0x328] sm:$0xff]  ;;  %v125_v27 = vld [vmem:[%s2974_s1 + $0x2d8] sm:$0xff]  ;;  %v1495_v29 = vpack.c.bf16 %v122_v21, %v119_v17  ;;  %v1671_v31 = vpack.c.bf16 %v189_v23, %v186_v22  ;;  %v138_v32 = vld [vmem:[%s2974_s1 + $0x340] sm:$0xff] }
  0x24   :  { %v1669_v28 = vpack.c.bf16 %v135_v20, %v132_v19  ;;  %v141_v33 = vld [vmem:[%s2974_s1 + $0x358] sm:$0xff]  ;;  %v27_v34 = vld [vmem:[%s2973_s0] sm:$0xff]  ;;  %v192_v35 = vld [vmem:[%s2974_s1 + $0x4f0] sm:$0xff] }
  0x25   :  { %1474 = vmatpush1.bf16.msra.mxu0 %v1473_v26  ;;  %1658 = vmatpush3.bf16.msra.mxu1 %v1657_v54  ;;  %v121_v26 = vld [vmem:[%s2974_s1 + $0x2b8] sm:$0xff]  ;;  %v195_v36 = vld [vmem:[%s2974_s1 + $0x508] sm:$0xff]  ;;  %v1673_v40 = vpack.c.bf16 %v141_v33, %v138_v32  ;;  %v144_v44 = vld [vmem:[%s2974_s1 + $0x370] sm:$0xff] }
  0x26   :  { %1476 = vmatprep.subr.bf16.mxu0 %v1475_v30  ;;  %1660 = vmatprep.subr.bf16.mxu1 %v1659_v57  ;;  %v128_v30 = vld [vmem:[%s2974_s1 + $0x2f0] sm:$0xff]  ;;  %v1497_v37 = vpack.c.bf16 %v121_v26, %v118_v25  ;;  %v127_v39 = vld [vmem:[%s2974_s1 + $0x2e8] sm:$0xff]  ;;  %v1675_v43 = vpack.c.bf16 %v195_v36, %v192_v35  ;;  %v134_v46 = vld [vmem:[%s2974_s1 + $0x320] sm:$0xff] }
  0x27   :  { %v1499_v41 = vpack.c.bf16 %v128_v30, %v125_v27  ;;  %v147_v45 = vld [vmem:[%s2974_s1 + $0x388] sm:$0xff]  ;;  %v198_v47 = vld [vmem:[%s2974_s1 + $0x520] sm:$0xff]  ;;  %v201_v48 = vld [vmem:[%s2974_s1 + $0x538] sm:$0xff] }
  0x28   :  { %v133_v52 = vld [vmem:[%s2974_s1 + $0x318] sm:$0xff]  ;;  %v1677_v54 = vpack.c.bf16 %v147_v45, %v144_v44  ;;  %v140_v56 = vld [vmem:[%s2974_s1 + $0x350] sm:$0xff]  ;;  %v1679_v57 = vpack.c.bf16 %v201_v48, %v198_v47  ;;  %v150_v58 = vld [vmem:[%s2974_s1 + $0x3a0] sm:$0xff] }
  0x29   :  { %1478 = vmatpush1.bf16.msra.mxu0 %v1477_v38  ;;  %1662 = vmatpush3.bf16.msra.mxu1 %v1661_v2  ;;  %v124_v38 = vld [vmem:[%s2974_s1 + $0x2d0] sm:$0xff]  ;;  %v137_v53 = vld [vmem:[%s2974_s1 + $0x338] sm:$0xff]  ;;  %v207_v61 = vld [vmem:[%s2974_s1 + $0x568] sm:$0xff] }
  0x2a   :  { %1480 = vmatprep.subr.bf16.mxu0 %v1479_v42  ;;  %1664 = vmatprep.subr.bf16.mxu1 %v1663_v5  ;;  %v131_v42 = vld [vmem:[%s2974_s1 + $0x308] sm:$0xff]  ;;  %v1501_v49 = vpack.c.bf16 %v127_v39, %v124_v38  ;;  %v153_v59 = vld [vmem:[%s2974_s1 + $0x3b8] sm:$0xff]  ;;  %v204_v60 = vld [vmem:[%s2974_s1 + $0x550] sm:$0xff] }
  0x2b   :  { %v30_v62 = vld [vmem:[%s2973_s0 + $0x18] sm:$0xff]  ;;  %v136_v0 = vld [vmem:[%s2974_s1 + $0x330] sm:$0xff]  ;;  %v139_v1 = vld [vmem:[%s2974_s1 + $0x348] sm:$0xff]  ;;  %v1681_v2 = vpack.c.bf16 %v153_v59, %v150_v58  ;;  %v1683_v5 = vpack.c.bf16 %v207_v61, %v204_v60 }
  0x2c   :  { %v143_v4 = vld [vmem:[%s2974_s1 + $0x368] sm:$0xff]  ;;  %v156_v6 = vld [vmem:[%s2974_s1 + $0x3d0] sm:$0xff]  ;;  %v146_v9 = vld [vmem:[%s2974_s1 + $0x380] sm:$0xff] }
  0x2d   :  { %1482 = vmatpush1.bf16.msra.mxu0 %v1481_v50  ;;  %1666 = vmatpush3.bf16.msra.mxu1 %v1665_v15  ;;  %v130_v50 = vld [vmem:[%s2974_s1 + $0x300] sm:$0xff]  ;;  %v159_v8 = vld [vmem:[%s2974_s1 + $0x3e8] sm:$0xff]  ;;  %v213_v11 = vld [vmem:[%s2974_s1 + $0x598] sm:$0xff] }
  0x2e   :  { %1484 = vmatprep.subr.bf16.mxu0 %v1483_v55  ;;  %1668 = vmatprep.subr.bf16.mxu1 %v1667_v18  ;;  %v1503_v55 = vpack.c.bf16 %v134_v46, %v131_v42  ;;  %v210_v10 = vld [vmem:[%s2974_s1 + $0x580] sm:$0xff]  ;;  %v145_v14 = vld [vmem:[%s2974_s1 + $0x378] sm:$0xff]  ;;  %v1685_v15 = vpack.c.bf16 %v159_v8, %v156_v6  ;;  %v152_v21 = vld [vmem:[%s2974_s1 + $0x3b0] sm:$0xff] }
  0x2f   :  { %v142_v13 = vld [vmem:[%s2974_s1 + $0x360] sm:$0xff]  ;;  %v149_v17 = vld [vmem:[%s2974_s1 + $0x398] sm:$0xff]  ;;  %v1687_v18 = vpack.c.bf16 %v213_v11, %v210_v10  ;;  %v216_v22 = vld [vmem:[%s2974_s1 + $0x5b0] sm:$0xff] }
  0x30   :  { %698 = vmatmul.mubr.f32.vlgmr.msra.gmra.mrb[2].mxu1 %v27_v34  ;;  %v162_v19 = vld [vmem:[%s2974_s1 + $0x400] sm:$0xff]  ;;  %v165_v20 = vld [vmem:[%s2974_s1 + $0x418] sm:$0xff]  ;;  %v219_v23 = vld [vmem:[%s2974_s1 + $0x5c8] sm:$0xff] }
  0x31   :  { %1486 = vmatpush1.bf16.msra.mxu0 %v1485_v63  ;;  %1670 = vmatpush3.bf16.msra.mxu1 %v1669_v28  ;;  %v1505_v63 = vpack.c.bf16 %v133_v52, %v130_v50  ;;  %v148_v25 = vld [vmem:[%s2974_s1 + $0x390] sm:$0xff]  ;;  %v151_v26 = vld [vmem:[%s2974_s1 + $0x3a8] sm:$0xff]  ;;  %v1689_v27 = vpack.c.bf16 %v165_v20, %v162_v19  ;;  %v1515_v28 = vpack.c.bf16 %v152_v21, %v149_v17  ;;  %v158_v33 = vld [vmem:[%s2974_s1 + $0x3e0] sm:$0xff] }
  0x32   :  { %1488 = vmatprep.subr.bf16.mxu0 %v1487_v3  ;;  %1672 = vmatprep.subr.bf16.mxu1 %v1671_v31  ;;  %v1507_v3 = vpack.c.bf16 %v140_v56, %v137_v53  ;;  %v1691_v30 = vpack.c.bf16 %v219_v23, %v216_v22  ;;  %v168_v31 = vld [vmem:[%s2974_s1 + $0x430] sm:$0xff]  ;;  %v171_v32 = vld [vmem:[%s2974_s1 + $0x448] sm:$0xff]  ;;  %v225_v35 = vld [vmem:[%s2974_s1 + $0x5f8] sm:$0xff]  ;;  %v1517_v36 = vpack.c.bf16 %v151_v26, %v148_v25 }
  0x33   :  { %767 = vmatprep.mubr.f32.mxu1 %v30_v62  ;;  %v157_v38 = vld [vmem:[%s2974_s1 + $0x3d8] sm:$0xff]  ;;  %v1693_v39 = vpack.c.bf16 %v171_v32, %v168_v31  ;;  %v164_v45 = vld [vmem:[%s2974_s1 + $0x410] sm:$0xff]  ;;  %v279_v47 = vld [vmem:[%s2974_s1 + $0x7a8] sm:$0xff] }
  0x34   :  { %v177_v44 = vld [vmem:[%s2974_s1 + $0x478] sm:$0xff]  ;;  %v276_v46 = vld [vmem:[%s2974_s1 + $0x790] sm:$0xff]  ;;  %v163_v50 = vld [vmem:[%s2974_s1 + $0x408] sm:$0xff] }
  0x35   :  { %1490 = vmatpush1.bf16.msra.mxu0 %v1489_v12  ;;  %1674 = vmatpush3.bf16.msra.mxu1 %v1673_v40  ;;  %v1509_v12 = vpack.c.bf16 %v139_v1, %v136_v0  ;;  %v228_v56 = vld [vmem:[%s2974_s1 + $0x610] sm:$0xff]  ;;  %v170_v58 = vld [vmem:[%s2974_s1 + $0x440] sm:$0xff]  ;;  %v285_v60 = vld [vmem:[%s2974_s1 + $0x7d8] sm:$0xff] }
  0x36   :  { %1492 = vmatprep.subr.bf16.mxu0 %v1491_v16  ;;  %1676 = vmatprep.subr.bf16.mxu1 %v1675_v43  ;;  %v1511_v16 = vpack.c.bf16 %v146_v9, %v143_v4  ;;  %v174_v43 = vld [vmem:[%s2974_s1 + $0x460] sm:$0xff]  ;;  %v2389_v0 = vld [vmem:[%s2973_s0 + $0x10] sm:$0xff]  ;;  %v237_v6 = vld [vmem:[%s2974_s1 + $0x658] sm:$0xff] }
  0x37   :  { %v1697_v52 = vpack.c.bf16 %v177_v44, %v174_v43  ;;  %v282_v59 = vld [vmem:[%s2974_s1 + $0x7c0] sm:$0xff]  ;;  %v176_v8 = vld [vmem:[%s2974_s1 + $0x470] sm:$0xff]  ;;  %v291_v10 = vld [vmem:[%s2974_s1 + $0x808] sm:$0xff] }
  0x38   :  { %v1703_v4 = vpack.c.bf16 %v285_v60, %v282_v59  ;;  %v288_v9 = vld [vmem:[%s2974_s1 + $0x7f0] sm:$0xff]  ;;  %v2413_v11 = vld [vmem:[%s2973_s0 + $0x28] sm:$0xff]  ;;  %v182_v21 = vld [vmem:[%s2974_s1 + $0x4a0] sm:$0xff] }
  0x39   :  { %1494 = vmatpush1.bf16.msra.mxu0 %v1493_v24  ;;  %1678 = vmatpush3.bf16.msra.mxu1 %v1677_v54  ;;  %v1513_v24 = vpack.c.bf16 %v145_v14, %v142_v13  ;;  %v167_v54 = vld [vmem:[%s2974_s1 + $0x428] sm:$0xff]  ;;  %v172_v13 = vld [vmem:[%s2974_s1 + $0x450] sm:$0xff]  ;;  %v294_v22 = vld [vmem:[%s2974_s1 + $0x820] sm:$0xff] }
  0x3a   :  { %1496 = vmatprep.subr.bf16.mxu0 %v1495_v29  ;;  %1680 = vmatprep.subr.bf16.mxu1 %v1679_v57  ;;  %v155_v29 = vld [vmem:[%s2974_s1 + $0x3c8] sm:$0xff]  ;;  %v240_v19 = vld [vmem:[%s2974_s1 + $0x670] sm:$0xff]  ;;  %v297_v23 = vld [vmem:[%s2974_s1 + $0x838] sm:$0xff] }
  0x3b   :  { %v1519_v40 = vpack.c.bf16 %v158_v33, %v155_v29  ;;  %v231_v57 = vld [vmem:[%s2974_s1 + $0x628] sm:$0xff]  ;;  %v178_v25 = vld [vmem:[%s2974_s1 + $0x480] sm:$0xff]  ;;  %v181_v26 = vld [vmem:[%s2974_s1 + $0x498] sm:$0xff] }
  0x3c   :  { %v1701_v1 = vpack.c.bf16 %v231_v57, %v228_v56  ;;  %v175_v14 = vld [vmem:[%s2974_s1 + $0x468] sm:$0xff]  ;;  %v185_v29 = vld [vmem:[%s2974_s1 + $0x4b8] sm:$0xff]  ;;  %v246_v31 = vld [vmem:[%s2974_s1 + $0x6a0] sm:$0xff] }
  0x3d   :  { %1498 = vmatpush1.bf16.msra.mxu0 %v1497_v37  ;;  %1682 = vmatpush3.bf16.msra.mxu1 %v1681_v2  ;;  %v154_v37 = vld [vmem:[%s2974_s1 + $0x3c0] sm:$0xff]  ;;  %v1527_v2 = vpack.c.bf16 %v170_v58, %v167_v54  ;;  %v179_v17 = vld [vmem:[%s2974_s1 + $0x488] sm:$0xff]  ;;  %v249_v32 = vld [vmem:[%s2974_s1 + $0x6b8] sm:$0xff] }
  0x3e   :  { %1500 = vmatprep.subr.bf16.mxu0 %v1499_v41  ;;  %1684 = vmatprep.subr.bf16.mxu1 %v1683_v5  ;;  %v161_v41 = vld [vmem:[%s2974_s1 + $0x3f8] sm:$0xff]  ;;  %v1521_v48 = vpack.c.bf16 %v157_v38, %v154_v37  ;;  %v234_v5 = vld [vmem:[%s2974_s1 + $0x640] sm:$0xff]  ;;  %v243_v20 = vld [vmem:[%s2974_s1 + $0x688] sm:$0xff] }
  0x3f   :  { %v1523_v53 = vpack.c.bf16 %v164_v45, %v161_v41  ;;  %v188_v33 = vld [vmem:[%s2974_s1 + $0x4d0] sm:$0xff]  ;;  %v187_v38 = vld [vmem:[%s2974_s1 + $0x4c8] sm:$0xff]  ;;  %v194_v45 = vld [vmem:[%s2974_s1 + $0x500] sm:$0xff] }
  0x40   :  { %v184_v37 = vld [vmem:[%s2974_s1 + $0x4b0] sm:$0xff]  ;;  %v191_v41 = vld [vmem:[%s2974_s1 + $0x4e8] sm:$0xff] }
  0x41   :  { %1502 = vmatpush1.bf16.msra.mxu0 %v1501_v49  ;;  %1686 = vmatpush3.bf16.msra.mxu1 %v1685_v15  ;;  %v160_v49 = vld [vmem:[%s2974_s1 + $0x3f0] sm:$0xff]  ;;  %v1705_v15 = vpack.c.bf16 %v237_v6, %v234_v5  ;;  %v255_v44 = vld [vmem:[%s2974_s1 + $0x6e8] sm:$0xff] }
  0x42   :  { %1504 = vmatprep.subr.bf16.mxu0 %v1503_v55  ;;  %1688 = vmatprep.subr.bf16.mxu1 %v1687_v18  ;;  %v1699_v55 = vpack.c.bf16 %v279_v47, %v276_v46  ;;  %v1525_v61 = vpack.c.bf16 %v163_v50, %v160_v49  ;;  %v1707_v18 = vpack.c.bf16 %v291_v10, %v288_v9  ;;  %v252_v43 = vld [vmem:[%s2974_s1 + $0x6d0] sm:$0xff]  ;;  %v306_v46 = vld [vmem:[%s2974_s1 + $0x880] sm:$0xff]  ;;  %v309_v47 = vld [vmem:[%s2974_s1 + $0x898] sm:$0xff] }
  0x43   :  { %v190_v49 = vld [vmem:[%s2974_s1 + $0x4e0] sm:$0xff]  ;;  %v193_v50 = vld [vmem:[%s2974_s1 + $0x4f8] sm:$0xff] }
  0x44   :  { %414 = vmatmul.mubr.f32.vlgmr.msra.gmra.mrb[0].mxu0 %v27_v34  ;;  %v222_v34 = vld [vmem:[%s2974_s1 + $0x5e0] sm:$0xff] }
  0x45   :  { %1506 = vmatpush1.bf16.msra.mxu0 %v1505_v63  ;;  %484 = vmatprep.mubr.f32.mxu0 %v30_v62  ;;  %v1695_v42 = vpack.c.bf16 %v225_v35, %v222_v34  ;;  %v166_v62 = vld [vmem:[%s2974_s1 + $0x420] sm:$0xff]  ;;  %v169_v63 = vld [vmem:[%s2974_s1 + $0x438] sm:$0xff]  ;;  %v300_v34 = vld [vmem:[%s2974_s1 + $0x850] sm:$0xff] }
  0x46   :  { %1508 = vmatprep.subr.bf16.mxu0 %v1507_v3  ;;  %1690 = vmatpush3.bf16.msra.mxu1 %v1689_v27  ;;  %v173_v3 = vld [vmem:[%s2974_s1 + $0x458] sm:$0xff]  ;;  %v1709_v27 = vpack.c.bf16 %v243_v20, %v240_v19  ;;  %v303_v35 = vld [vmem:[%s2974_s1 + $0x868] sm:$0xff] }
  0x47   :  { %1692 = vmatprep.subr.bf16.mxu1 %v1691_v30  ;;  %v1711_v30 = vpack.c.bf16 %v297_v23, %v294_v22 }
  0x49   :  { %1510 = vmatpush1.bf16.msra.mxu0 %v1509_v12  ;;  %v1529_v12 = vpack.c.bf16 %v169_v63, %v166_v62 }
  0x4a   :  { %1512 = vmatprep.subr.bf16.mxu0 %v1511_v16  ;;  %1694 = vmatpush3.bf16.msra.mxu1 %v1693_v39  ;;  %v1531_v16 = vpack.c.bf16 %v176_v8, %v173_v3  ;;  %v1713_v39 = vpack.c.bf16 %v249_v32, %v246_v31 }
  0x4b   :  { %1696 = vmatprep.subr.bf16.mxu1 %v1695_v42  ;;  %v1715_v42 = vpack.c.bf16 %v303_v35, %v300_v34 }
  0x4d   :  { %1514 = vmatpush1.bf16.msra.mxu0 %v1513_v24  ;;  %v1533_v24 = vpack.c.bf16 %v175_v14, %v172_v13 }
  0x4e   :  { %1516 = vmatprep.subr.bf16.mxu0 %v1515_v28  ;;  %1698 = vmatpush3.bf16.msra.mxu1 %v1697_v52  ;;  %v1535_v28 = vpack.c.bf16 %v182_v21, %v179_v17  ;;  %v1717_v52 = vpack.c.bf16 %v255_v44, %v252_v43 }
  0x4f   :  { %1700 = vmatprep.subr.bf16.mxu1 %v1699_v55 }
  0x51   :  { %1518 = vmatpush1.bf16.msra.mxu0 %v1517_v36  ;;  %768 = vmatmul.mubr.f32.vlgmr.msra.gmra.mrb[4].mxu1 %v2389_v0  ;;  %v1537_v36 = vpack.c.bf16 %v181_v26, %v178_v25 }
  0x52   :  { %1520 = vmatprep.subr.bf16.mxu0 %v1519_v40  ;;  %1702 = vmatpush3.bf16.msra.mxu1 %v1701_v1  ;;  %v1539_v40 = vpack.c.bf16 %v188_v33, %v185_v29 }
  0x53   :  { %1704 = vmatprep.subr.bf16.mxu1 %v1703_v4  ;;  %837 = vmatprep.mubr.f32.mxu1 %v2413_v11 }
  0x55   :  { %1522 = vmatpush1.bf16.msra.mxu0 %v1521_v48  ;;  %v1541_v48 = vpack.c.bf16 %v187_v38, %v184_v37 }
  0x56   :  { %1524 = vmatprep.subr.bf16.mxu0 %v1523_v53  ;;  %1706 = vmatpush3.bf16.msra.mxu1 %v1705_v15 }
  0x57   :  { %1708 = vmatprep.subr.bf16.mxu1 %v1707_v18 }
  0x59   :  { %1526 = vmatpush1.bf16.msra.mxu0 %v1525_v61 }
  0x5a   :  { %1528 = vmatprep.subr.bf16.mxu0 %v1527_v2  ;;  %1710 = vmatpush3.bf16.msra.mxu1 %v1709_v27 }
  0x5b   :  { %1712 = vmatprep.subr.bf16.mxu1 %v1711_v30 }
  0x5d   :  { %1530 = vmatpush1.bf16.msra.mxu0 %v1529_v12 }
  0x5e   :  { %1532 = vmatprep.subr.bf16.mxu0 %v1531_v16  ;;  %1714 = vmatpush3.bf16.msra.mxu1 %v1713_v39 }
  0x61   :  { %1534 = vmatpush1.bf16.msra.mxu0 %v1533_v24 }
  0x62   :  { %1536 = vmatprep.subr.bf16.mxu0 %v1535_v28 }
  0x65   :  { %1538 = vmatpush1.bf16.msra.mxu0 %v1537_v36 }
  0x66   :  { %12 = vsyncpa [#allocation3], 0  ;;  %1540 = vmatprep.subr.bf16.mxu0 %v1539_v40  ;;  %v1543_v53 = vpack.c.bf16 %v194_v45, %v191_v41  ;;  %v197_v54 = vld [vmem:[%s2974_s1 + $0x518] sm:$0xff]  ;;  %1716 = vmatprep.subr.bf16.mxu1 %v1715_v42  ;;  %v1719_v55 = vpack.c.bf16 %v309_v47, %v306_v46  ;;  %v258_v56 = vld [vmem:[%s2974_s1 + $0x700] sm:$0xff]  ;;  %v1545_v61 = vpack.c.bf16 %v193_v50, %v190_v49  ;;  %v1828_v37 = vmov 0.0|0.0  }
  0x67   :  { %v261_v57 = vld [vmem:[%s2974_s1 + $0x718] sm:$0xff]  ;;  %v200_v58 = vld [vmem:[%s2974_s1 + $0x530] sm:$0xff]  ;;  %v315_v60 = vld [vmem:[%s2974_s1 + $0x8c8] sm:$0xff]  ;;  %1718 = vmatpush3.bf16.msra.mxu1 %v1717_v52  ;;  %vm1829_vm1 = vmmov 0   ;;  %vm963_vm2 = vcmask 523264   ;;  %vm1126_vm3 = vcmask 1041408  }
  0x68   :  { %v312_v59 = vld [vmem:[%s2974_s1 + $0x8b0] sm:$0xff]  ;;  %v199_v63 = vld [vmem:[%s2974_s1 + $0x528] sm:$0xff]  ;;  %v1721_v1 = vpack.c.bf16 %v261_v57, %v258_v56  ;;  %v1547_v2 = vpack.c.bf16 %v200_v58, %v197_v54  ;;  %1720 = vmatprep.subr.bf16.mxu1 %v1719_v55  ;;  %v206_v8 = vld [vmem:[%s2974_s1 + $0x560] sm:$0xff]  ;;  %vm1122_vm4 = vcmask 408576   ;;  %vm1201_vm5 = vcmask 80896  }
  0x69   :  { %1542 = vmatpush1.bf16.msra.mxu0 %v1541_v48  ;;  %v196_v62 = vld [vmem:[%s2974_s1 + $0x510] sm:$0xff]  ;;  %v203_v3 = vld [vmem:[%s2974_s1 + $0x548] sm:$0xff]  ;;  %v1723_v4 = vpack.c.bf16 %v315_v60, %v312_v59  ;;  %v318_v9 = vld [vmem:[%s2974_s1 + $0x8e0] sm:$0xff] }
  0x6a   :  { %1544 = vmatprep.subr.bf16.mxu0 %v1543_v53  ;;  %v264_v5 = vld [vmem:[%s2974_s1 + $0x730] sm:$0xff]  ;;  %v267_v6 = vld [vmem:[%s2974_s1 + $0x748] sm:$0xff]  ;;  %v321_v10 = vld [vmem:[%s2974_s1 + $0x8f8] sm:$0xff]  ;;  %v1549_v12 = vpack.c.bf16 %v199_v63, %v196_v62  ;;  %v1551_v15 = vpack.c.bf16 %v206_v8, %v203_v3 }
  0x6b   :  { %v202_v13 = vld [vmem:[%s2974_s1 + $0x540] sm:$0xff]  ;;  %1722 = vmatpush3.bf16.msra.mxu1 %v1721_v1  ;;  %v1725_v14 = vpack.c.bf16 %v267_v6, %v264_v5  ;;  %v205_v16 = vld [vmem:[%s2974_s1 + $0x558] sm:$0xff]  ;;  %v1727_v17 = vpack.c.bf16 %v321_v10, %v318_v9  ;;  %v212_v21 = vld [vmem:[%s2974_s1 + $0x590] sm:$0xff] }
  0x6c   :  { %1724 = vmatprep.subr.bf16.mxu1 %v1723_v4  ;;  %v270_v18 = vld [vmem:[%s2974_s1 + $0x760] sm:$0xff]  ;;  %v273_v19 = vld [vmem:[%s2974_s1 + $0x778] sm:$0xff]  ;;  %v1553_v22 = vpack.c.bf16 %v205_v16, %v202_v13  ;;  %v208_v23 = vld [vmem:[%s2974_s1 + $0x570] sm:$0xff] }
  0x6d   :  { %1546 = vmatpush1.bf16.msra.mxu0 %v1545_v61  ;;  %v209_v20 = vld [vmem:[%s2974_s1 + $0x578] sm:$0xff]  ;;  %v1729_v24 = vpack.c.bf16 %v273_v19, %v270_v18  ;;  %v211_v26 = vld [vmem:[%s2974_s1 + $0x588] sm:$0xff]  ;;  %v324_v27 = vld [vmem:[%s2974_s1 + $0x910] sm:$0xff] }
  0x6e   :  { %1548 = vmatprep.subr.bf16.mxu0 %v1547_v2  ;;  %v1555_v25 = vpack.c.bf16 %v212_v21, %v209_v20  ;;  %v327_v28 = vld [vmem:[%s2974_s1 + $0x928] sm:$0xff]  ;;  %v218_v30 = vld [vmem:[%s2974_s1 + $0x5c0] sm:$0xff]  ;;  %v1557_v31 = vpack.c.bf16 %v211_v26, %v208_v23  ;;  %v217_v36 = vld [vmem:[%s2974_s1 + $0x5b8] sm:$0xff] }
  0x6f   :  { %1726 = vmatpush3.bf16.msra.mxu1 %v1725_v14  ;;  %v215_v29 = vld [vmem:[%s2974_s1 + $0x5a8] sm:$0xff]  ;;  %v2575_v32 = vld [vmem:[%s2973_s0 + $0x20] sm:$0xff]  ;;  %v1732_v33 = vpack.c.bf16 %v327_v28, %v324_v27  ;;  %v221_v38 = vld [vmem:[%s2974_s1 + $0x5d8] sm:$0xff] }
  0x70   :  { %1728 = vmatprep.subr.bf16.mxu1 %v1727_v17  ;;  %v1559_v34 = vpack.c.bf16 %v218_v30, %v215_v29  ;;  %v214_v35 = vld [vmem:[%s2974_s1 + $0x5a0] sm:$0xff]  ;;  %v224_v39 = vld [vmem:[%s2974_s1 + $0x5f0] sm:$0xff]  ;;  %v223_v43 = vld [vmem:[%s2974_s1 + $0x5e8] sm:$0xff] }
  0x71   :  { %1550 = vmatpush1.bf16.msra.mxu0 %v1549_v12  ;;  %v1561_v40 = vpack.c.bf16 %v217_v36, %v214_v35  ;;  %v1563_v41 = vpack.c.bf16 %v224_v39, %v221_v38  ;;  %v220_v42 = vld [vmem:[%s2974_s1 + $0x5d0] sm:$0xff]  ;;  %v227_v44 = vld [vmem:[%s2974_s1 + $0x608] sm:$0xff]  ;;  %v230_v45 = vld [vmem:[%s2974_s1 + $0x620] sm:$0xff] }
  0x72   :  { %1552 = vmatprep.subr.bf16.mxu0 %v1551_v15  ;;  %v1565_v46 = vpack.c.bf16 %v223_v43, %v220_v42  ;;  %v1567_v47 = vpack.c.bf16 %v230_v45, %v227_v44  ;;  %v226_v48 = vld [vmem:[%s2974_s1 + $0x600] sm:$0xff]  ;;  %v229_v49 = vld [vmem:[%s2974_s1 + $0x618] sm:$0xff]  ;;  %v232_v54 = vld [vmem:[%s2974_s1 + $0x630] sm:$0xff] }
  0x73   :  { %1730 = vmatpush3.bf16.msra.mxu1 %v1729_v24  ;;  %v233_v50 = vld [vmem:[%s2974_s1 + $0x638] sm:$0xff]  ;;  %v1569_v52 = vpack.c.bf16 %v229_v49, %v226_v48  ;;  %v235_v55 = vld [vmem:[%s2974_s1 + $0x648] sm:$0xff]  ;;  %v242_v57 = vld [vmem:[%s2974_s1 + $0x680] sm:$0xff] }
  0x74   :  { %1731 = vmatprep.subr.bf16.mxu1 %v1828_v37  ;;  %v239_v56 = vld [vmem:[%s2974_s1 + $0x668] sm:$0xff]  ;;  %v1573_v58 = vpack.c.bf16 %v235_v55, %v232_v54  ;;  %v238_v60 = vld [vmem:[%s2974_s1 + $0x660] sm:$0xff]  ;;  %v241_v61 = vld [vmem:[%s2974_s1 + $0x678] sm:$0xff] }
  0x75   :  { %1554 = vmatpush1.bf16.msra.mxu0 %v1553_v22  ;;  %v1575_v59 = vpack.c.bf16 %v242_v57, %v239_v56  ;;  %v245_v62 = vld [vmem:[%s2974_s1 + $0x698] sm:$0xff]  ;;  %v244_v1 = vld [vmem:[%s2974_s1 + $0x690] sm:$0xff]  ;;  %v247_v2 = vld [vmem:[%s2974_s1 + $0x6a8] sm:$0xff] }
  0x76   :  { %1556 = vmatprep.subr.bf16.mxu0 %v1555_v25  ;;  %838 = vmatmul.mubr.f32.vlgmr.msra.gmra.mrb[6].mxu1 %v2575_v32  ;;  %v251_v3 = vld [vmem:[%s2974_s1 + $0x6c8] sm:$0xff]  ;;  %v254_v4 = vld [vmem:[%s2974_s1 + $0x6e0] sm:$0xff]  ;;  %v1581_v5 = vpack.c.bf16 %v247_v2, %v244_v1  ;;  %v253_v9 = vld [vmem:[%s2974_s1 + $0x6d8] sm:$0xff] }
  0x77   :  { %1733 = vmatpush3.bf16.msra.mxu1 %v1732_v33  ;;  %1400 = vmatprep.mubr.msk.f32.mxu1 %vm1829_vm1, %v1827_v7  ;;  %v1583_v6 = vpack.c.bf16 %v254_v4, %v251_v3  ;;  %v250_v8 = vld [vmem:[%s2974_s1 + $0x6c0] sm:$0xff]  ;;  %v257_v10 = vld [vmem:[%s2974_s1 + $0x6f8] sm:$0xff]  ;;  %v260_v12 = vld [vmem:[%s2974_s1 + $0x710] sm:$0xff] }
  0x78   :  { %v1585_v13 = vpack.c.bf16 %v253_v9, %v250_v8  ;;  %v1587_v14 = vpack.c.bf16 %v260_v12, %v257_v10  ;;  %v256_v15 = vld [vmem:[%s2974_s1 + $0x6f0] sm:$0xff]  ;;  %v259_v16 = vld [vmem:[%s2974_s1 + $0x708] sm:$0xff]  ;;  %v266_v18 = vld [vmem:[%s2974_s1 + $0x740] sm:$0xff] }
  0x79   :  { %1558 = vmatpush1.bf16.msra.mxu0 %v1557_v31  ;;  %v263_v17 = vld [vmem:[%s2974_s1 + $0x728] sm:$0xff]  ;;  %v1589_v19 = vpack.c.bf16 %v259_v16, %v256_v15  ;;  %v262_v21 = vld [vmem:[%s2974_s1 + $0x720] sm:$0xff]  ;;  %v265_v22 = vld [vmem:[%s2974_s1 + $0x738] sm:$0xff] }
  0x7a   :  { %1560 = vmatprep.subr.bf16.mxu0 %v1559_v34  ;;  %1401 = vmatmul.mubr.msk.f32.vlgmr.msra.gmra.mrb[8].mxu1 %vm345_vm0, %v1980_v51  ;;  %v236_v51 = vld [vmem:[%s2974_s1 + $0x650] sm:$0xff]  ;;  %v1591_v20 = vpack.c.bf16 %v266_v18, %v263_v17  ;;  %v269_v23 = vld [vmem:[%s2974_s1 + $0x758] sm:$0xff]  ;;  %v1593_v25 = vpack.c.bf16 %v265_v22, %v262_v21  ;;  %v271_v28 = vld [vmem:[%s2974_s1 + $0x768] sm:$0xff] }
  0x7b   :  { %v1571_v53 = vpack.c.bf16 %v236_v51, %v233_v50  ;;  %v272_v24 = vld [vmem:[%s2974_s1 + $0x770] sm:$0xff]  ;;  %v275_v29 = vld [vmem:[%s2974_s1 + $0x788] sm:$0xff]  ;;  %v278_v30 = vld [vmem:[%s2974_s1 + $0x7a0] sm:$0xff] }
  0x7c   :  { %v1595_v26 = vpack.c.bf16 %v272_v24, %v269_v23  ;;  %v268_v27 = vld [vmem:[%s2974_s1 + $0x750] sm:$0xff]  ;;  %v1599_v33 = vpack.c.bf16 %v278_v30, %v275_v29  ;;  %v274_v34 = vld [vmem:[%s2974_s1 + $0x780] sm:$0xff]  ;;  %v277_v35 = vld [vmem:[%s2974_s1 + $0x798] sm:$0xff] }
  0x7d   :  { %1562 = vmatpush1.bf16.msra.mxu0 %v1561_v40  ;;  %v1597_v31 = vpack.c.bf16 %v271_v28, %v268_v27  ;;  %v281_v36 = vld [vmem:[%s2974_s1 + $0x7b8] sm:$0xff]  ;;  %v284_v38 = vld [vmem:[%s2974_s1 + $0x7d0] sm:$0xff]  ;;  %v1601_v39 = vpack.c.bf16 %v277_v35, %v274_v34  ;;  %v283_v42 = vld [vmem:[%s2974_s1 + $0x7c8] sm:$0xff] }
  0x7e   :  { %1564 = vmatprep.subr.bf16.mxu0 %v1563_v41  ;;  %v1603_v40 = vpack.c.bf16 %v284_v38, %v281_v36  ;;  %v280_v41 = vld [vmem:[%s2974_s1 + $0x7b0] sm:$0xff]  ;;  %v287_v43 = vld [vmem:[%s2974_s1 + $0x7e8] sm:$0xff]  ;;  %v290_v44 = vld [vmem:[%s2974_s1 + $0x800] sm:$0xff] }
  0x7f   :  { %v1605_v45 = vpack.c.bf16 %v283_v42, %v280_v41  ;;  %v289_v48 = vld [vmem:[%s2974_s1 + $0x7f8] sm:$0xff]  ;;  %v296_v50 = vld [vmem:[%s2974_s1 + $0x830] sm:$0xff]  ;;  %v295_v54 = vld [vmem:[%s2974_s1 + $0x828] sm:$0xff] }
  0x80   :  { %v293_v49 = vld [vmem:[%s2974_s1 + $0x818] sm:$0xff]  ;;  %v299_v55 = vld [vmem:[%s2974_s1 + $0x848] sm:$0xff]  ;;  %v302_v56 = vld [vmem:[%s2974_s1 + $0x860] sm:$0xff] }
  0x81   :  { %1566 = vmatpush1.bf16.msra.mxu0 %v1565_v46  ;;  %v1607_v46 = vpack.c.bf16 %v290_v44, %v287_v43  ;;  %v307_v1 = vld [vmem:[%s2974_s1 + $0x888] sm:$0xff]  ;;  %v314_v3 = vld [vmem:[%s2974_s1 + $0x8c0] sm:$0xff]  ;;  %v313_v8 = vld [vmem:[%s2974_s1 + $0x8b8] sm:$0xff] }
  0x82   :  { %1568 = vmatprep.subr.bf16.mxu0 %v1567_v47  ;;  %v286_v47 = vld [vmem:[%s2974_s1 + $0x7e0] sm:$0xff]  ;;  %v311_v2 = vld [vmem:[%s2974_s1 + $0x8a8] sm:$0xff]  ;;  %v317_v9 = vld [vmem:[%s2974_s1 + $0x8d8] sm:$0xff] }
  0x83   :  { %v1609_v51 = vpack.c.bf16 %v289_v48, %v286_v47  ;;  %v320_v10 = vld [vmem:[%s2974_s1 + $0x8f0] sm:$0xff]  ;;  %v319_v15 = vld [vmem:[%s2974_s1 + $0x8e8] sm:$0xff]  ;;  %v932_v17 = vld [vmem:[%s2976_s3 + $0x80] sm:$0xff] }
  0x84   :  { %485 = vmatmul.mubr.f32.vlgmr.msra.gmra.mrb[0].mxu0 %v2389_v0  ;;  %v248_v0 = vld [vmem:[%s2974_s1 + $0x6b0] sm:$0xff]  ;;  %v933_v18 = vld [vmem:[%s2976_s3 + $0x88] sm:$0xff]  ;;  %v935_v22 = vld [vmem:[%s2976_s3 + $0x98] sm:$0xff] }
  0x85   :  { %1570 = vmatpush1.bf16.msra.mxu0 %v1569_v52  ;;  %555 = vmatprep.mubr.f32.mxu0 %v2413_v11  ;;  %v1577_v11 = vpack.c.bf16 %v241_v61, %v238_v60  ;;  %v1579_v63 = vpack.c.bf16 %v248_v0, %v245_v62  ;;  %v1611_v52 = vpack.c.bf16 %v296_v50, %v293_v49  ;;  %v301_v60 = vld [vmem:[%s2974_s1 + $0x858] sm:$0xff]  ;;  %v308_v62 = vld [vmem:[%s2974_s1 + $0x890] sm:$0xff]  ;;  %v917_v21 = vld [vmem:[%s2976_s3 + $0x8] sm:$0xff] }
  0x86   :  { %1572 = vmatprep.subr.bf16.mxu0 %v1571_v53  ;;  %v292_v53 = vld [vmem:[%s2974_s1 + $0x810] sm:$0xff]  ;;  %v305_v61 = vld [vmem:[%s2974_s1 + $0x878] sm:$0xff]  ;;  %v936_v27 = vld [vmem:[%s2976_s3 + $0xa0] sm:$0xff] }
  0x87   :  { %v1613_v57 = vpack.c.bf16 %v295_v54, %v292_v53  ;;  %v937_v28 = vld [vmem:[%s2976_s3 + $0xa8] sm:$0xff]  ;;  %v938_v34 = vld [vmem:[%s2976_s3 + $0xb0] sm:$0xff]  ;;  %v939_v35 = vld [vmem:[%s2976_s3 + $0xb8] sm:$0xff] }
  0x88   :  { %v1742_v30 = vpack.c.bf16 %v937_v28, %v936_v27  ;;  %v1746_v38 = vpack.c.bf16 %v939_v35, %v938_v34  ;;  %v940_v41 = vld [vmem:[%s2976_s3 + $0xc0] sm:$0xff]  ;;  %v941_v42 = vld [vmem:[%s2976_s3 + $0xc8] sm:$0xff]  ;;  %v942_v47 = vld [vmem:[%s2976_s3 + $0xd0] sm:$0xff] }
  0x89   :  { %1574 = vmatpush1.bf16.msra.mxu0 %v1573_v58  ;;  %v1615_v58 = vpack.c.bf16 %v302_v56, %v299_v55  ;;  %v1750_v44 = vpack.c.bf16 %v941_v42, %v940_v41  ;;  %v943_v48 = vld [vmem:[%s2976_s3 + $0xd8] sm:$0xff]  ;;  %v948_v34 = vld [vmem:[%s2976_s3 + $0x100] sm:$0xff]  ;;  %v949_v35 = vld [vmem:[%s2976_s3 + $0x108] sm:$0xff] }
  0x8a   :  { %1576 = vmatprep.subr.bf16.mxu0 %v1575_v59  ;;  %v298_v59 = vld [vmem:[%s2974_s1 + $0x840] sm:$0xff]  ;;  %v1754_v50 = vpack.c.bf16 %v943_v48, %v942_v47  ;;  %v950_v41 = vld [vmem:[%s2976_s3 + $0x110] sm:$0xff]  ;;  %v951_v42 = vld [vmem:[%s2976_s3 + $0x118] sm:$0xff] }
  0x8b   :  { %v1617_v0 = vpack.c.bf16 %v301_v60, %v298_v59  ;;  %v944_v59 = vld [vmem:[%s2976_s3 + $0xe0] sm:$0xff]  ;;  %v945_v60 = vld [vmem:[%s2976_s3 + $0xe8] sm:$0xff]  ;;  %v954_v47 = vld [vmem:[%s2976_s3 + $0x130] sm:$0xff] }
  0x8c   :  { %v955_v48 = vld [vmem:[%s2976_s3 + $0x138] sm:$0xff] }
  0x8d   :  { %1578 = vmatpush1.bf16.msra.mxu0 %v1577_v11  ;;  %v1619_v11 = vpack.c.bf16 %v308_v62, %v305_v61  ;;  %v1758_v61 = vpack.c.bf16 %v945_v60, %v944_v59  ;;  %v928_v62 = vld [vmem:[%s2976_s3 + $0x60] sm:$0xff]  ;;  %v1114_v60 = vld [vmem:[%s2978_s5 + $0x30] sm:$0x3] }
  0x8e   :  { %1580 = vmatprep.subr.bf16.mxu0 %v1579_v63  ;;  %v304_v63 = vld [vmem:[%s2974_s1 + $0x870] sm:$0xff] }
  0x8f   :  { %v1621_v4 = vpack.c.bf16 %v307_v1, %v304_v63  ;;  %v946_v63 = vld [vmem:[%s2976_s3 + $0xf0] sm:$0xff]  ;;  %v947_v1 = vld [vmem:[%s2976_s3 + $0xf8] sm:$0xff] }
  0x91   :  { %1582 = vmatpush1.bf16.msra.mxu0 %v1581_v5  ;;  %v1623_v5 = vpack.c.bf16 %v314_v3, %v311_v2  ;;  %v1762_v2 = vpack.c.bf16 %v947_v1, %v946_v63  ;;  %v930_v3 = vld [vmem:[%s2976_s3 + $0x70] sm:$0xff] }
  0x92   :  { %1584 = vmatprep.subr.bf16.mxu0 %v1583_v6  ;;  %v310_v6 = vld [vmem:[%s2974_s1 + $0x8a0] sm:$0xff] }
  0x93   :  { %v1625_v12 = vpack.c.bf16 %v313_v8, %v310_v6  ;;  %v330_v6 = vlaneseq }
  0x95   :  { %1586 = vmatpush1.bf16.msra.mxu0 %v1585_v13  ;;  %v1627_v13 = vpack.c.bf16 %v320_v10, %v317_v9  ;;  %v331_v8 = vshrl.u32 %v330_v6, 7  ;;  %v328_v10 = vld [vmem:[%s2975_s2] sm:$0x7] }
  0x96   :  { %1588 = vmatprep.subr.bf16.mxu0 %v1587_v14  ;;  %v316_v14 = vld [vmem:[%s2974_s1 + $0x8d0] sm:$0xff] }
  0x97   :  { %v1629_v16 = vpack.c.bf16 %v319_v15, %v316_v14  ;;  %v340_v9 = vsub.s32 2, %v331_v8 }
  0x99   :  { %1590 = vmatpush1.bf16.msra.mxu0 %v1589_v19  ;;  %v916_v19 = vld [vmem:[%s2976_s3] sm:$0xff] }
  0x9a   :  { %1592 = vmatprep.subr.bf16.mxu0 %v1591_v20  ;;  %v1734_v20 = vpack.c.bf16 %v933_v18, %v932_v17  ;;  %v1736_v23 = vpack.c.bf16 %v917_v21, %v916_v19 }
  0x9c   :  { %1735 = vmatprep.subr.bf16.mxu1 %v1734_v20 }
  0x9d   :  { %1594 = vmatpush1.bf16.msra.mxu0 %v1593_v25  ;;  %v918_v25 = vld [vmem:[%s2976_s3 + $0x10] sm:$0xff]  ;;  %1737 = vmatpush3.bf16.msra.mxu1 %v1736_v23 }
  0x9e   :  { %1596 = vmatprep.subr.bf16.mxu0 %v1595_v26  ;;  %v919_v26 = vld [vmem:[%s2976_s3 + $0x18] sm:$0xff] }
  0x9f   :  { %v1740_v29 = vpack.c.bf16 %v919_v26, %v918_v25  ;;  %v336_v25 = vsub.s32 1, %v331_v8 }
  0xa1   :  { %1598 = vmatpush1.bf16.msra.mxu0 %v1597_v31  ;;  %v920_v31 = vld [vmem:[%s2976_s3 + $0x20] sm:$0xff]  ;;  %v337_v27 = vrot.slane %v328_v10, %v336_v25 }
  0xa2   :  { %1600 = vmatprep.subr.bf16.mxu0 %v1599_v33  ;;  %v921_v33 = vld [vmem:[%s2976_s3 + $0x28] sm:$0xff] }
  0xa3   :  { %v1744_v36 = vpack.c.bf16 %v921_v33, %v920_v31 }
  0xa5   :  { %1602 = vmatpush1.bf16.msra.mxu0 %v1601_v39  ;;  %v922_v39 = vld [vmem:[%s2976_s3 + $0x30] sm:$0xff] }
  0xa6   :  { %1604 = vmatprep.subr.bf16.mxu0 %v1603_v40  ;;  %v923_v40 = vld [vmem:[%s2976_s3 + $0x38] sm:$0xff] }
  0xa7   :  { %v1748_v43 = vpack.c.bf16 %v923_v40, %v922_v39  ;;  %v1767_v39 = vpack.c.bf16 %v949_v35, %v948_v34 }
  0xa9   :  { %1606 = vmatpush1.bf16.msra.mxu0 %v1605_v45  ;;  %v924_v45 = vld [vmem:[%s2976_s3 + $0x40] sm:$0xff] }
  0xaa   :  { %1608 = vmatprep.subr.bf16.mxu0 %v1607_v46  ;;  %v925_v46 = vld [vmem:[%s2976_s3 + $0x48] sm:$0xff] }
  0xab   :  { %v1752_v49 = vpack.c.bf16 %v925_v46, %v924_v45  ;;  %v953_v45 = vld [vmem:[%s2976_s3 + $0x128] sm:$0xff] }
  0xad   :  { %1610 = vmatpush1.bf16.msra.mxu0 %v1609_v51  ;;  %v926_v51 = vld [vmem:[%s2976_s3 + $0x50] sm:$0xff] }
  0xae   :  { %1612 = vmatprep.subr.bf16.mxu0 %v1611_v52  ;;  %v927_v52 = vld [vmem:[%s2976_s3 + $0x58] sm:$0xff] }
  0xaf   :  { %v1756_v53 = vpack.c.bf16 %v927_v52, %v926_v51  ;;  %v1108_v51 = vld [vmem:[%s2978_s5] sm:$0xff]  ;;  %v1109_v52 = vld [vmem:[%s2978_s5 + $0x8] sm:$0xff] }
  0xb1   :  { %1614 = vmatpush1.bf16.msra.mxu0 %v1613_v57 }
  0xb2   :  { %1616 = vmatprep.subr.bf16.mxu0 %v1615_v58 }
  0xb5   :  { %1618 = vmatpush1.bf16.msra.mxu0 %v1617_v0  ;;  %v929_v0 = vld [vmem:[%s2976_s3 + $0x68] sm:$0xff] }
  0xb6   :  { %1620 = vmatprep.subr.bf16.mxu0 %v1619_v11  ;;  %v1760_v11 = vpack.c.bf16 %v929_v0, %v928_v62  ;;  %v1231_v0 = vld [vmem:[%s2977_s4] ss:$0 sm:$0xff]  ;;  %s1830_s4 = smov [#allocation2]  }
  0xb9   :  { %1622 = vmatpush1.bf16.msra.mxu0 %v1621_v4  ;;  %v931_v4 = vld [vmem:[%s2976_s3 + $0x78] sm:$0xff] }
  0xba   :  { %1624 = vmatprep.subr.bf16.mxu0 %v1623_v5  ;;  %v1764_v5 = vpack.c.bf16 %v931_v4, %v930_v3 }
  0xbd   :  { %1626 = vmatpush1.bf16.msra.mxu0 %v1625_v12  ;;  %v341_v12 = vrot.slane %v328_v10, %v340_v9 }
  0xbe   :  { %1628 = vmatprep.subr.bf16.mxu0 %v1627_v13 }
  0xc1   :  { %1630 = vmatpush1.bf16.msra.mxu0 %v1629_v16 }
  0xc4   :  { %556 = vmatmul.mubr.f32.vlgmr.msra.gmra.mrb[0].mxu0 %v2575_v32  ;;  %v934_v32 = vld [vmem:[%s2976_s3 + $0x90] sm:$0xff] }
  0xc5   :  { %v1738_v24 = vpack.c.bf16 %v935_v22, %v934_v32 }
  0xc7   :  { %1739 = vmatprep.subr.bf16.mxu1 %v1738_v24  ;;  %v332_v24 = vsub.s32 0, %v331_v8 }
  0xc8   :  { %1741 = vmatpush3.bf16.msra.mxu1 %v1740_v29 }
  0xc9   :  { %1743 = vmatprep.subr.bf16.mxu1 %v1742_v30  ;;  %v333_v26 = vrot.slane %v328_v10, %v332_v24 }
  0xcc   :  { %1745 = vmatpush3.bf16.msra.mxu1 %v1744_v36 }
  0xcd   :  { %1747 = vmatprep.subr.bf16.mxu1 %v1746_v38 }
  0xd0   :  { %1749 = vmatpush3.bf16.msra.mxu1 %v1748_v43  ;;  %v1770_v43 = vpack.c.bf16 %v951_v42, %v950_v41 }
  0xd1   :  { %1751 = vmatprep.subr.bf16.mxu1 %v1750_v44  ;;  %v952_v44 = vld [vmem:[%s2976_s3 + $0x120] sm:$0xff] }
  0xd2   :  { %v1773_v46 = vpack.c.bf16 %v953_v45, %v952_v44 }
  0xd4   :  { %1753 = vmatpush3.bf16.msra.mxu1 %v1752_v49  ;;  %v1776_v49 = vpack.c.bf16 %v955_v48, %v954_v47 }
  0xd5   :  { %1755 = vmatprep.subr.bf16.mxu1 %v1754_v50 }
  0xd8   :  { %1757 = vmatpush3.bf16.msra.mxu1 %v1756_v53  ;;  %v1110_v53 = vld [vmem:[%s2978_s5 + $0x10] sm:$0xff] }
  0xd9   :  { %1759 = vmatprep.subr.bf16.mxu1 %v1758_v61 }
  0xdc   :  { %1761 = vmatpush3.bf16.msra.mxu1 %v1760_v11 }
  0xdd   :  { %1763 = vmatprep.subr.bf16.mxu1 %v1762_v2 }
  0xe0   :  { %1765 = vmatpush3.bf16.msra.mxu1 %v1764_v5 }
  0xe1   :  { %1766 = vmatprep.subr.bf16.mxu1 %v1828_v37 }
  0xe3   :  { %v628_v54 = vpop.f32.mrb[0].mxu1 }
  0xe4   :  { %v630_v55 = vpop.f32.mrb[1].mxu1 }
 0x103   :  { %v1268_v56 = vpop.f32.mrb[2].mxu1 }
 0x104   :  { %v1269_v57 = vpop.f32.mrb[3].mxu1 }
 0x105   :  { %v1270_v58 = vadd.f32 %v1269_v57, %v1268_v56  ;;  %v1112_v57 = vld [vmem:[%s2978_s5 + $0x20] sm:$0xff] }
 0x107   :  { %v700_v13 = vadd.f32 %v1270_v58, %v341_v12  ;;  %v1113_v58 = vld [vmem:[%s2978_s5 + $0x28] sm:$0xff] }
 0x108   :  { %v1785_v59 = vpack.c.bf16 %v1113_v58, %v1112_v57 }
 0x124   :  { %v1303_v14 = vpop.f32.mrb[4].mxu1 }
 0x125   :  { %v1304_v15 = vpop.f32.mrb[5].mxu1 }
 0x126   :  { %v1305_v16 = vadd.f32 %v1304_v15, %v1303_v14 }
 0x128   :  { %v770_v17 = vadd.f32 %v1305_v16, %v700_v13 }
 0x149   :  { %v1338_v18 = vpop.f32.mrb[6].mxu1 }
 0x14a   :  { %v1339_v19 = vpop.f32.mrb[7].mxu1 }
 0x14b   :  { %v1340_v20 = vadd.f32 %v1339_v19, %v1338_v18 }
 0x14d   :  { %v840_v21 = vadd.f32 %v1340_v20, %v770_v17  ;;  %v909_v32 = vpop.f32.mrb[8].mxu1 }
 0x14e   :  { %v1402_v22 = vpop.f32.mrb[9].mxu1 }
 0x14f   :  { %v910_v23 = vadd.f32 %v909_v32, %v840_v21 }
 0x151   :  { %v915_v50 = vmax.f32 %v910_v23, 0.0 }
 0x197   :  { %v557_v28 = vpop.f32.mrb[0].mxu0 }
 0x198   :  { %v1787_v29 = vadd.f32 %v557_v28, %v333_v26  ;;  %v559_v30 = vpop.f32.mrb[1].mxu0 }
 0x199   :  { %v1789_v31 = vadd.f32 %v559_v30, %v337_v27 }
 0x19a   :  { %v1788_v33 = vadd.f32 %v1787_v29, %v628_v54  ;;  %v1779_v54 = vpack.c.bf16 %v1109_v52, %v1108_v51 }
 0x19b   :  { %v1790_v36 = vadd.f32 %v1789_v31, %v630_v55  ;;  %v1111_v55 = vld [vmem:[%s2978_s5 + $0x18] sm:$0xff]  ;;  %s1221_s5 = sshll.u32 %s1830_s4, 4  ;;  %s1222_s5 = int_to_ptr.vmem [resolvable:$true] %s1221_s5 }
 0x19c   :  { %v913_v40 = vmax.f32 %v1788_v33, 0.0  ;;  %v1782_v56 = vpack.c.bf16 %v1111_v55, %v1110_v53  ;;  %p1808_p1 = scmp.lt.s32.totalorder %s1222_s5, %s1222_s5 }
 0x19d   :  { %v914_v38 = vmax.f32 %v1790_v36, 0.0 }
 0x19f   :  { %1031 = vmatprep.mubr.f32.mxu1 %v914_v38 }
 0x1a0   :  { %1032 = vmatmul.mubr.f32.vlgmr.msra.gmra.mrb[10].mxu1 %v913_v40 }
 0x1a1   :  { %1768 = vmatpush3.bf16.msra.mxu1 %v1767_v39  ;;  %1419 = vmatprep.mubr.msk.f32.mxu1 %vm1829_vm1, %v1827_v7 }
 0x1a2   :  { %1769 = vmatprep.subr.bf16.mxu1 %v1828_v37 }
 0x1a5   :  { %1771 = vmatpush3.bf16.msra.mxu1 %v1770_v43 }
 0x1a6   :  { %1772 = vmatprep.subr.bf16.mxu1 %v1828_v37 }
 0x1a9   :  { %1774 = vmatpush3.bf16.msra.mxu1 %v1773_v46 }
 0x1aa   :  { %1775 = vmatprep.subr.bf16.mxu1 %v1828_v37 }
 0x1ad   :  { %1777 = vmatpush3.bf16.msra.mxu1 %v1776_v49 }
 0x1ae   :  { %1778 = vmatprep.subr.bf16.mxu1 %v1828_v37 }
 0x1b0   :  { %1420 = vmatmul.mubr.msk.f32.vlgmr.msra.gmra.mrb[12].mxu1 %vm963_vm2, %v915_v50 }
 0x1b1   :  { %1436 = vmatprep.mubr.msk.f32.mxu1 %vm1829_vm1, %v1827_v7  ;;  %1780 = vmatpush3.bf16.msra.mxu1 %v1779_v54 }
 0x1b2   :  { %1781 = vmatprep.subr.bf16.mxu1 %v1828_v37 }
 0x1b5   :  { %1783 = vmatpush3.bf16.msra.mxu1 %v1782_v56 }
 0x1b6   :  { %1784 = vmatprep.subr.bf16.mxu1 %v1828_v37 }
 0x1b9   :  { %1786 = vmatpush3.bf16.msra.mxu1 %v1785_v59 }
 0x1ba   :  { %1434 = vmatprep.subr.mxu1 %v1827_v7  ;;  %v1233_v7 = vld [vmem:[%s2979_s6] ss:$0 sm:$0xff]  ;;  %s1803_s6 = scalar_lea.vmem %s1222_s5, 128 }
 0x1bb   :  { %p1804_p0 = scmp.ne.s32.totalorder %s1222_s5, %s1803_s6  ;;  %p1809_p2 = scmp.lt.s32.totalorder %s1803_s6, %s1803_s6 }
 0x1bd   :  { %1435 = vmatpush3.msk.msra.mxu1 %vm1126_vm3, %v1114_v60  ;;  %p1810_p3 = por %p1809_p2, %p1808_p1 }
 0x1bf   :  { %p1811_p4 = pnand %p1810_p3, %p1804_p0 }
 0x273   :  { %v1376_v61 = vpop.f32.mrb[10].mxu1 }
 0x274   :  { %v1377_v37 = vpop.f32.mrb[11].mxu1 }
 0x275   :  { %v1378_v62 = vadd.f32 %v1377_v37, %v1376_v61 }
 0x277   :  { %v1034_v11 = vadd.f32 %v1378_v62, %v1231_v0 }
 0x283   :  { %v1103_v63 = vpop.f32.mrb[12].mxu1 }
 0x284   :  { %v1104_v1 = vadd.f32 %v1103_v63, %v1034_v11  ;;  %v1421_v2 = vpop.f32.mrb[13].mxu1 }
 0x286   :  { %v1107_v3 = vmax.f32 %v1104_v1, 0.0 }
 0x288   :  { %1437 = vmatmul.mubr.msk.f32.vlgmr.msra.gmra.mrb[14].mxu1 %vm1122_vm4, %v1107_v3 }
 0x35b   :  { %v1196_v4 = vpop.f32.mrb[14].mxu1 }
 0x35c   :  { %v1197_v5 = vadd.f32 %v1233_v7, %v1196_v4  ;;  %v1438_v6 = vpop.f32.mrb[15].mxu1 }
 0x35e   :  { %v1200_v8 = vmax.f32 %v1197_v5, 0.0 }
 0x360   :  { %v1202_v9 = vsel %vm1201_vm5, %v1200_v8, -inf }
 0x361   :  { %1203 = vmax.xlane.f32.xlu0 %v1202_v9 }
 0x3ee   :  { %v1204_v10 = vpop.xlane.xlu0 %1203 }
 0x3ef   :  { %v1205_v12 = vsub.f32 %v1200_v8, %v1204_v10 }
 0x3f1   :  { %v1206_v13 = vmul.f32 1.442695, %v1205_v12 }
 0x3f3   :  { %1799 = vpow2.f32 %v1206_v13 }
 0x3fd   :  { %v1800_v14 = vpop.eup %1799 }
 0x3fe   :  { %v1208_v15 = vsel %vm1201_vm5, %v1800_v14, 0.0 }
 0x3ff   :  { %1209 = vadd.xlane.f32.xlu0 %v1208_v15 }
 0x48c   :  { %v1210_v16 = vpop.xlane.xlu0 %1209 }
 0x48d   :  { %1801 = vlog2.f32 %v1210_v16 }
 0x497   :  { %v1802_v17 = vpop.eup %1801 }
 0x498   :  { %v1212_v18 = vmul.f32 0.6931472, %v1802_v17 }
 0x49a   :  { %v1213_v19 = vsub.f32 %v1205_v12, %v1212_v18 }
 0x49c   :  { %1214 = vst.msk [vmem:[#allocation2] sm:$0xff] %vm1201_vm5, %v1213_v19 }
 0x49d   :  { %1814 = shalt.err (!%p1811_p4)
}
 0x49e   :  { %s1815_s21 = scalar_lea.hbm %s2980_s7, 128 }
 0x49f   :  { %p1816_p5 = scmp.ne.s32.totalorder %s2980_s7, %s1815_s21  ;;  %p1819_p6 = scmp.lt.u32.totalorder %s1815_s21, %s2980_s7 }
 0x4a1   :  { %p1821_p7 = pnand %p1819_p6, %p1816_p5 }
 0x4a3   :  { %1824 = shalt.err (!%p1821_p7)
}
 0x4a4   :  { %1224 = dma.vmem_to_hbm [thread:$0]  %s1222_s5, 128, %s2980_s7, [#allocation3]  }
 0x4a5   :  { %1825 = dma.done.wait [#allocation3], 128  }
 0x4a6   :  { %1826 = vsyncadd [#allocation3], 4294967168 }
 0x4a7   :  { %1228 = vsyncpa [#allocation3], 1 }

</bundles_post_ra>
